<compile_context>
chip_gen: v5e
topology: v5e:2x2
jax: 0.10.0
libtpu: 0.0.40
codegen_flags: <defaults>
</compile_context>

<pallas_src>
import functools

import jax
import jax.numpy as jnp
from jax.experimental import pallas as pl
from jax.experimental.pallas import tpu as pltpu


# ----------------------------------------------------------------------------
# Fused kernel: edge transform + scatter-add (per node tile) + node MLP
# ----------------------------------------------------------------------------
def output_pp_kernel(i_ref, rbf_ref, x_ref, w_rbf_ref, w_up_ref, b_up_ref,
                     w_lins_ref, b_lins_ref, w_out_ref, out_ref, acc_ref,
                     *, num_layers):
    n_id = pl.program_id(0)                 # node-tile index ("parallel")
    e_id = pl.program_id(1)                 # edge-tile index ("arbitrary", reduction)
    tn = acc_ref.shape[0]

    @pl.when(e_id == 0)
    def _zero_acc():
        acc_ref[...] = jnp.zeros_like(acc_ref)

    # ---- edge transform: t[e, h] = (rbf @ W_rbf)[e, h] * x[e, h] ------------
    t = jnp.dot(rbf_ref[...], w_rbf_ref[...],
                preferred_element_type=jnp.float32) * x_ref[...]       # [te, H] f32

    # ---- scatter-add into this node tile via a [tn, te] one-hot matmul ------
    te = t.shape[0]
    idx = i_ref[...]                                                    # [1, te] int32 (lane axis)
    rows = jax.lax.broadcasted_iota(jnp.int32, (tn, te), 0) + n_id * tn
    one_hot = (rows == idx).astype(jnp.float32)                         # [tn, te]
    acc_ref[...] += jnp.dot(one_hot, t, preferred_element_type=jnp.float32)

    # ---- after the last edge tile: run the node MLP, write lane-dense out ---
    @pl.when(e_id == pl.num_programs(1) - 1)
    def _node_mlp():
        cdt = w_up_ref.dtype                # matmul operand dtype (f32 or bf16)
        h = jnp.dot(acc_ref[...].astype(cdt), w_up_ref[...],
                    preferred_element_type=jnp.float32) + b_up_ref[...]
        for l in range(num_layers):         # static unroll; weights loaded JIT per layer
            z = jnp.dot(h.astype(cdt), w_lins_ref[l],
                        preferred_element_type=jnp.float32) + b_lins_ref[l]
            h = z * jax.nn.sigmoid(z)       # swish (beta=1), f32 on the EUP
        out_ref[...] = jnp.dot(h.astype(cdt), w_out_ref[...],
                               preferred_element_type=jnp.float32)


# ----------------------------------------------------------------------------
# Wrapper
# ----------------------------------------------------------------------------
def _pad_axis(a, target, axis):
    pad = target - a.shape[axis]
    if pad <= 0:
        return a
    widths = [(0, 0)] * a.ndim
    widths[axis] = (0, pad)
    return jnp.pad(a, widths)


def output_pp_block_forward(x, rbf, i, num_nodes, params, *, num_layers,
                            tile_e=128, tile_n=128,
                            mlp_matmul_dtype=jnp.float32):
    """x: [E, H] f32, rbf: [E, R] f32, i: [E] int node indices in [0, num_nodes)."""
    E, H = x.shape
    R = rbf.shape[1]
    O = params["w_up"].shape[1]
    C = params["w_out"].shape[1]
    L = num_layers

    LANE = 128
    E_pad = tile_e * pl.cdiv(E, tile_e)
    N_pad = tile_n * pl.cdiv(num_nodes, tile_n)
    O_pad = LANE * pl.cdiv(O, LANE)
    C_pad = LANE * pl.cdiv(C, LANE)
    n_node_tiles = N_pad // tile_n
    n_edge_tiles = E_pad // tile_e

    # Edge index on the lane axis; padded edges get -1 -> contribute nothing.
    i_row = jnp.full((1, E_pad), -1, dtype=jnp.int32)
    i_row = i_row.at[0, :E].set(i.astype(jnp.int32))
    rbf_p = _pad_axis(rbf.astype(jnp.float32), E_pad, 0)
    x_p = _pad_axis(x.astype(jnp.float32), E_pad, 0)

    # Zero-pad O/C feature dims to lane width (exact: padded lanes stay zero).
    w_rbf = params["w_rbf"].astype(jnp.float32)                                   # [R, H]
    w_up = _pad_axis(params["w_up"], O_pad, 1).astype(mlp_matmul_dtype)           # [H, O_pad]
    b_up = _pad_axis(params["b_up"], O_pad, 1).astype(jnp.float32)                # [1, O_pad]
    w_lins = _pad_axis(_pad_axis(params["w_lins"], O_pad, 1),
                       O_pad, 2).astype(mlp_matmul_dtype)                         # [L, O_pad, O_pad]
    b_lins = _pad_axis(params["b_lins"], O_pad, 2).astype(jnp.float32)            # [L, 1, O_pad]
    w_out = _pad_axis(_pad_axis(params["w_out"], O_pad, 0),
                      C_pad, 1).astype(mlp_matmul_dtype)                          # [O_pad, C_pad]

    grid_spec = pltpu.PrefetchScalarGridSpec(
        num_scalar_prefetch=0,
        grid=(n_node_tiles, n_edge_tiles),
        in_specs=[
            pl.BlockSpec((1, tile_e), lambda n, e: (0, e)),             # i      [1, E_pad]
            pl.BlockSpec((tile_e, R), lambda n, e: (e, 0)),             # rbf    [E_pad, R]
            pl.BlockSpec((tile_e, H), lambda n, e: (e, 0)),             # x      [E_pad, H]
            pl.BlockSpec((R, H), lambda n, e: (0, 0)),                  # w_rbf
            pl.BlockSpec((H, O_pad), lambda n, e: (0, 0)),              # w_up
            pl.BlockSpec((1, O_pad), lambda n, e: (0, 0)),              # b_up
            pl.BlockSpec((L, O_pad, O_pad), lambda n, e: (0, 0, 0)),    # w_lins
            pl.BlockSpec((L, 1, O_pad), lambda n, e: (0, 0, 0)),        # b_lins
            pl.BlockSpec((O_pad, C_pad), lambda n, e: (0, 0)),          # w_out
        ],
        out_specs=pl.BlockSpec((tile_n, C_pad), lambda n, e: (n, 0)),   # accumulator-resident
        scratch_shapes=[pltpu.VMEM((tile_n, H), jnp.float32)],          # per-node-tile scatter acc
    )

    flops = int(
        2 * n_node_tiles * E_pad * R * H            # rbf matmul (recomputed per node tile)
        + n_node_tiles * E_pad * H                  # elementwise product
        + 2 * E_pad * N_pad * H                     # one-hot scatter matmul
        + 2 * N_pad * H * O_pad                     # lin_up
        + 2 * L * N_pad * O_pad * O_pad             # hidden layers
        + 2 * N_pad * O_pad * C_pad)                # final lin
    bytes_accessed = int(4 * (
        n_node_tiles * E_pad * (1 + R + H)          # edge arrays re-read per node tile
        + R * H + H * O_pad + O_pad
        + L * (O_pad * O_pad + O_pad)
        + O_pad * C_pad
        + N_pad * C_pad))
    cost = pl.CostEstimate(flops=flops,
                           transcendentals=int(L * N_pad * O_pad),
                           bytes_accessed=bytes_accessed)

    out = pl.pallas_call(
        functools.partial(output_pp_kernel, num_layers=num_layers),
        out_shape=jax.ShapeDtypeStruct((N_pad, C_pad), jnp.float32),
        grid_spec=grid_spec,
        compiler_params=pltpu.CompilerParams(
            # node axis shards across TensorCores on v7x; edge axis is the reduction
            dimension_semantics=("parallel", "arbitrary"),
            # above the 16/32 MiB scoped defaults, with headroom on v7x's 64 MiB VMEM
            vmem_limit_bytes=48 * 1024 * 1024,
        ),
        cost_estimate=cost,
    )(i_row, rbf_p, x_p, w_rbf, w_up, b_up, w_lins, b_lins, w_out)

    return out[:num_nodes, :C]


# ----------------------------------------------------------------------------
# Plain-JAX reference (for correctness check)
# ----------------------------------------------------------------------------
def reference_forward(x, rbf, i, num_nodes, params, *, num_layers):
    t = (rbf @ params["w_rbf"]) * x
    nodes = jax.ops.segment_sum(t, i, num_segments=num_nodes)
    h = nodes @ params["w_up"] + params["b_up"]
    for l in range(num_layers):
        z = h @ params["w_lins"][l] + params["b_lins"][l]
        h = z * jax.nn.sigmoid(z)
    return h @ params["w_out"]


if __name__ == "__main__":
    # small shapes consistent with the module
    num_radial = 6
    hidden_channels = 32
    out_emb_channels = 16
    out_channels = 4
    num_layers = 2
    num_edges = 200      # > tile_e so the edge-reduction axis has 2 tiles
    num_nodes = 12       # > tile_n so the parallel node axis has 2 tiles

    key = jax.random.PRNGKey(0)
    ks = jax.random.split(key, 9)

    # Deterministic synthetic parameters, stored pre-transposed as [in, out].
    # NOTE: the torch module zero-fills the final lin weight; we use a nonzero
    # deterministic init so the kernel output is non-trivial.
    params = {
        "w_rbf": jax.random.normal(ks[0], (num_radial, hidden_channels), jnp.float32) * 0.1,
        "w_up": jax.random.normal(ks[1], (hidden_channels, out_emb_channels), jnp.float32) * 0.1,
        "b_up": jax.random.normal(ks[2], (1, out_emb_channels), jnp.float32) * 0.1,
        "w_lins": jax.random.normal(ks[3], (num_layers, out_emb_channels, out_emb_channels), jnp.float32) * 0.1,
        "b_lins": jax.random.normal(ks[4], (num_layers, 1, out_emb_channels), jnp.float32) * 0.1,
        "w_out": jax.random.normal(ks[5], (out_emb_channels, out_channels), jnp.float32) * 0.1,
    }

    x = jax.random.normal(ks[6], (num_edges, hidden_channels), jnp.float32)
    rbf = jax.random.normal(ks[7], (num_edges, num_radial), jnp.float32)
    i = jax.random.randint(ks[8], (num_edges,), 0, num_nodes, jnp.int32)

    out = output_pp_block_forward(
        x, rbf, i, num_nodes, params, num_layers=num_layers,
        tile_e=128, tile_n=8)   # small tiles so both grid axes (and the accumulator) are exercised
    out = jax.block_until_ready(out)

    ref = reference_forward(x, rbf, i, num_nodes, params, num_layers=num_layers)
    assert out.shape == (num_nodes, out_channels)
    assert jnp.allclose(out, ref, atol=1e-4, rtol=1e-4), "mismatch vs reference"

    print("KERNEL_OK")
</pallas_src>

<mosaic_0001>
module attributes {stable_mosaic.version = 11 : i64} {
  func.func @output_pp_kernel(%arg0: i32, %arg1: i32, %arg2: memref<1x128xi32, #tpu.memory_space<vmem>>, %arg3: memref<128x6xf32, #tpu.memory_space<vmem>>, %arg4: memref<128x32xf32, #tpu.memory_space<vmem>>, %arg5: memref<6x32xf32, #tpu.memory_space<vmem>>, %arg6: memref<32x128xf32, #tpu.memory_space<vmem>>, %arg7: memref<1x128xf32, #tpu.memory_space<vmem>>, %arg8: memref<2x128x128xf32, #tpu.memory_space<vmem>>, %arg9: memref<2x1x128xf32, #tpu.memory_space<vmem>>, %arg10: memref<128x128xf32, #tpu.memory_space<vmem>>, %arg11: memref<8x128xf32, #tpu.memory_space<vmem>>, %arg12: memref<8x32xf32, #tpu.memory_space<vmem>>) attributes {dimension_semantics = [#tpu.dimension_semantics<parallel>, #tpu.dimension_semantics<arbitrary>], iteration_bounds = array<i64: 2, 2>, scalar_prefetch = 0 : i64, scratch_operands = 1 : i64, tpu.core_type = #tpu.core_type<tc>, window_params = [{transform_indices = @transform_0, window_bounds = array<i64: 1, 128>}, {transform_indices = @transform_1, window_bounds = array<i64: 128, 6>}, {transform_indices = @transform_2, window_bounds = array<i64: 128, 32>}, {pipeline_mode = #tpu.pipeline_mode<synchronous>, transform_indices = @transform_3, window_bounds = array<i64: 6, 32>}, {pipeline_mode = #tpu.pipeline_mode<synchronous>, transform_indices = @transform_4, window_bounds = array<i64: 32, 128>}, {pipeline_mode = #tpu.pipeline_mode<synchronous>, transform_indices = @transform_5, window_bounds = array<i64: 1, 128>}, {pipeline_mode = #tpu.pipeline_mode<synchronous>, transform_indices = @transform_6, window_bounds = array<i64: 2, 128, 128>}, {pipeline_mode = #tpu.pipeline_mode<synchronous>, transform_indices = @transform_7, window_bounds = array<i64: 2, 1, 128>}, {pipeline_mode = #tpu.pipeline_mode<synchronous>, transform_indices = @transform_8, window_bounds = array<i64: 128, 128>}, {transform_indices = @transform_9, window_bounds = array<i64: 8, 128>}]} {
    %c0_i32 = arith.constant 0 : i32
    %0 = arith.cmpi eq, %arg1, %c0_i32 : i32
    %1 = arith.extui %0 : i1 to i32
    %c0_i32_0 = arith.constant 0 : i32
    %2 = arith.cmpi ne, %1, %c0_i32_0 : i32
    scf.if %2 {
      %cst_14 = arith.constant 0.000000e+00 : f32
      %24 = vector.broadcast %cst_14 : f32 to vector<8x32xf32>
      %c0_15 = arith.constant 0 : index
      %c0_16 = arith.constant 0 : index
      %25 = vector.load %arg12[%c0_15, %c0_16] : memref<8x32xf32, #tpu.memory_space<vmem>>, vector<8x32xf32>
      tpu.vector_store %arg12[%c0_15, %c0_16], %24 {strides = array<i32>} : memref<8x32xf32, #tpu.memory_space<vmem>>, vector<8x32xf32>,
    } else {
    }
    %c0 = arith.constant 0 : index
    %c0_1 = arith.constant 0 : index
    %3 = vector.load %arg3[%c0, %c0_1] : memref<128x6xf32, #tpu.memory_space<vmem>>, vector<128x6xf32>
    %c0_2 = arith.constant 0 : index
    %c0_3 = arith.constant 0 : index
    %4 = vector.load %arg5[%c0_2, %c0_3] : memref<6x32xf32, #tpu.memory_space<vmem>>, vector<6x32xf32>
    %cst = arith.constant dense<0.000000e+00> : vector<128x32xf32>
    %5 = tpu.matmul %3, %4, %cst {dimension_numbers = #tpu.dot_dimension_numbers<[1], [0], [0], [1], [0, 0, 1, 1], [], []>} : vector<128x6xf32>, vector<6x32xf32>, vector<128x32xf32> -> vector<128x32xf32>
    %c0_4 = arith.constant 0 : index
    %c0_5 = arith.constant 0 : index
    %6 = vector.load %arg4[%c0_4, %c0_5] : memref<128x32xf32, #tpu.memory_space<vmem>>, vector<128x32xf32>
    %7 = arith.mulf %5, %6 : vector<128x32xf32>
    %c0_6 = arith.constant 0 : index
    %c0_7 = arith.constant 0 : index
    %8 = vector.load %arg2[%c0_6, %c0_7] : memref<1x128xi32, #tpu.memory_space<vmem>>, vector<1x128xi32>
    %9 = tpu.iota {dimensions = array<i32: 0>} : vector<8x128xi32>
    %c8_i32 = arith.constant 8 : i32
    %10 = arith.muli %arg0, %c8_i32 : i32
    %11 = vector.broadcast %10 : i32 to vector<8x128xi32>
    %12 = arith.addi %9, %11 : vector<8x128xi32>
    %13 = vector.broadcast %8 : vector<1x128xi32> to vector<8x128xi32>
    %14 = arith.cmpi eq, %12, %13 : vector<8x128xi32>
    %15 = arith.extui %14 : vector<8x128xi1> to vector<8x128xi32>
    %16 = arith.sitofp %15 : vector<8x128xi32> to vector<8x128xf32>
    %c0_8 = arith.constant 0 : index
    %c0_9 = arith.constant 0 : index
    %17 = vector.load %arg12[%c0_8, %c0_9] : memref<8x32xf32, #tpu.memory_space<vmem>>, vector<8x32xf32>
    %cst_10 = arith.constant dense<0.000000e+00> : vector<8x32xf32>
    %18 = tpu.matmul %16, %7, %cst_10 {dimension_numbers = #tpu.dot_dimension_numbers<[1], [0], [0], [1], [0, 0, 1, 1], [], []>} : vector<8x128xf32>, vector<128x32xf32>, vector<8x32xf32> -> vector<8x32xf32>
    %19 = arith.addf %17, %18 : vector<8x32xf32>
    %c0_11 = arith.constant 0 : index
    %c0_12 = arith.constant 0 : index
    %20 = vector.load %arg12[%c0_11, %c0_12] : memref<8x32xf32, #tpu.memory_space<vmem>>, vector<8x32xf32>
    tpu.vector_store %arg12[%c0_11, %c0_12], %19 {strides = array<i32>} : memref<8x32xf32, #tpu.memory_space<vmem>>, vector<8x32xf32>,
    %c1_i32 = arith.constant 1 : i32
    %21 = arith.cmpi eq, %arg1, %c1_i32 : i32
    %22 = arith.extui %21 : i1 to i32
    %c0_i32_13 = arith.constant 0 : i32
    %23 = arith.cmpi ne, %22, %c0_i32_13 : i32
    scf.if %23 {
      %c0_14 = arith.constant 0 : index
      %c0_15 = arith.constant 0 : index
      %24 = vector.load %arg12[%c0_14, %c0_15] : memref<8x32xf32, #tpu.memory_space<vmem>>, vector<8x32xf32>
      %c0_16 = arith.constant 0 : index
      %c0_17 = arith.constant 0 : index
      %25 = vector.load %arg6[%c0_16, %c0_17] : memref<32x128xf32, #tpu.memory_space<vmem>>, vector<32x128xf32>
      %cst_18 = arith.constant dense<0.000000e+00> : vector<8x128xf32>
      %26 = tpu.matmul %24, %25, %cst_18 {dimension_numbers = #tpu.dot_dimension_numbers<[1], [0], [0], [1], [0, 0, 1, 1], [], []>} : vector<8x32xf32>, vector<32x128xf32>, vector<8x128xf32> -> vector<8x128xf32>
      %c0_19 = arith.constant 0 : index
      %c0_20 = arith.constant 0 : index
      %27 = vector.load %arg7[%c0_19, %c0_20] : memref<1x128xf32, #tpu.memory_space<vmem>>, vector<1x128xf32>
      %28 = vector.broadcast %27 : vector<1x128xf32> to vector<8x128xf32>
      %29 = arith.addf %26, %28 : vector<8x128xf32>
      %c0_21 = arith.constant 0 : index
      %c0_22 = arith.constant 0 : index
      %c0_23 = arith.constant 0 : index
      %30 = vector.load %arg8[%c0_21, %c0_22, %c0_23] : memref<2x128x128xf32, #tpu.memory_space<vmem>>, vector<1x128x128xf32>
      %31 = vector.shape_cast %30 : vector<1x128x128xf32> to vector<128x128xf32>
      %cst_24 = arith.constant dense<0.000000e+00> : vector<8x128xf32>
      %32 = tpu.matmul %29, %31, %cst_24 {dimension_numbers = #tpu.dot_dimension_numbers<[1], [0], [0], [1], [0, 0, 1, 1], [], []>} : vector<8x128xf32>, vector<128x128xf32>, vector<8x128xf32> -> vector<8x128xf32>
      %c0_25 = arith.constant 0 : index
      %c0_26 = arith.constant 0 : index
      %c0_27 = arith.constant 0 : index
      %33 = vector.load %arg9[%c0_25, %c0_26, %c0_27] : memref<2x1x128xf32, #tpu.memory_space<vmem>>, vector<1x1x128xf32>
      %34 = vector.shape_cast %33 : vector<1x1x128xf32> to vector<1x128xf32>
      %35 = vector.broadcast %34 : vector<1x128xf32> to vector<8x128xf32>
      %36 = arith.addf %32, %35 : vector<8x128xf32>
      %37 = arith.negf %36 : vector<8x128xf32>
      %38 = math.exp %37 : vector<8x128xf32>
      %cst_28 = arith.constant 1.000000e+00 : f32
      %39 = vector.broadcast %cst_28 : f32 to vector<8x128xf32>
      %40 = arith.addf %39, %38 : vector<8x128xf32>
      %41 = arith.divf %39, %40 : vector<8x128xf32>
      %42 = arith.mulf %36, %41 : vector<8x128xf32>
      %c1 = arith.constant 1 : index
      %c0_29 = arith.constant 0 : index
      %c0_30 = arith.constant 0 : index
      %43 = vector.load %arg8[%c1, %c0_29, %c0_30] : memref<2x128x128xf32, #tpu.memory_space<vmem>>, vector<1x128x128xf32>
      %44 = vector.shape_cast %43 : vector<1x128x128xf32> to vector<128x128xf32>
      %cst_31 = arith.constant dense<0.000000e+00> : vector<8x128xf32>
      %45 = tpu.matmul %42, %44, %cst_31 {dimension_numbers = #tpu.dot_dimension_numbers<[1], [0], [0], [1], [0, 0, 1, 1], [], []>} : vector<8x128xf32>, vector<128x128xf32>, vector<8x128xf32> -> vector<8x128xf32>
      %c1_32 = arith.constant 1 : index
      %c0_33 = arith.constant 0 : index
      %c0_34 = arith.constant 0 : index
      %46 = vector.load %arg9[%c1_32, %c0_33, %c0_34] : memref<2x1x128xf32, #tpu.memory_space<vmem>>, vector<1x1x128xf32>
      %47 = vector.shape_cast %46 : vector<1x1x128xf32> to vector<1x128xf32>
      %48 = vector.broadcast %47 : vector<1x128xf32> to vector<8x128xf32>
      %49 = arith.addf %45, %48 : vector<8x128xf32>
      %50 = arith.negf %49 : vector<8x128xf32>
      %51 = math.exp %50 : vector<8x128xf32>
      %cst_35 = arith.constant 1.000000e+00 : f32
      %52 = vector.broadcast %cst_35 : f32 to vector<8x128xf32>
      %53 = arith.addf %52, %51 : vector<8x128xf32>
      %54 = arith.divf %52, %53 : vector<8x128xf32>
      %55 = arith.mulf %49, %54 : vector<8x128xf32>
      %c0_36 = arith.constant 0 : index
      %c0_37 = arith.constant 0 : index
      %56 = vector.load %arg10[%c0_36, %c0_37] : memref<128x128xf32, #tpu.memory_space<vmem>>, vector<128x128xf32>
      %cst_38 = arith.constant dense<0.000000e+00> : vector<8x128xf32>
      %57 = tpu.matmul %55, %56, %cst_38 {dimension_numbers = #tpu.dot_dimension_numbers<[1], [0], [0], [1], [0, 0, 1, 1], [], []>} : vector<8x128xf32>, vector<128x128xf32>, vector<8x128xf32> -> vector<8x128xf32>
      %c0_39 = arith.constant 0 : index
      %c0_40 = arith.constant 0 : index
      %58 = vector.load %arg11[%c0_39, %c0_40] : memref<8x128xf32, #tpu.memory_space<vmem>>, vector<8x128xf32>
      tpu.vector_store %arg11[%c0_39, %c0_40], %57 {strides = array<i32>} : memref<8x128xf32, #tpu.memory_space<vmem>>, vector<8x128xf32>,
    } else {
    }
    return
  }
  func.func @transform_0(%arg0: i32, %arg1: i32) -> (i32, i32) {
    %c0_i32 = arith.constant 0 : i32
    %c0_i32_0 = arith.constant 0 : i32
    return %c0_i32, %arg1 : i32, i32
  }
  func.func @transform_1(%arg0: i32, %arg1: i32) -> (i32, i32) {
    %c0_i32 = arith.constant 0 : i32
    %c0_i32_0 = arith.constant 0 : i32
    return %arg1, %c0_i32 : i32, i32
  }
  func.func @transform_2(%arg0: i32, %arg1: i32) -> (i32, i32) {
    %c0_i32 = arith.constant 0 : i32
    %c0_i32_0 = arith.constant 0 : i32
    return %arg1, %c0_i32 : i32, i32
  }
  func.func @transform_3(%arg0: i32, %arg1: i32) -> (i32, i32) {
    %c0_i32 = arith.constant 0 : i32
    %c0_i32_0 = arith.constant 0 : i32
    %c0_i32_1 = arith.constant 0 : i32
    return %c0_i32, %c0_i32_0 : i32, i32
  }
  func.func @transform_4(%arg0: i32, %arg1: i32) -> (i32, i32) {
    %c0_i32 = arith.constant 0 : i32
    %c0_i32_0 = arith.constant 0 : i32
    %c0_i32_1 = arith.constant 0 : i32
    return %c0_i32, %c0_i32_0 : i32, i32
  }
  func.func @transform_5(%arg0: i32, %arg1: i32) -> (i32, i32) {
    %c0_i32 = arith.constant 0 : i32
    %c0_i32_0 = arith.constant 0 : i32
    %c0_i32_1 = arith.constant 0 : i32
    return %c0_i32, %c0_i32_0 : i32, i32
  }
  func.func @transform_6(%arg0: i32, %arg1: i32) -> (i32, i32, i32) {
    %c0_i32 = arith.constant 0 : i32
    %c0_i32_0 = arith.constant 0 : i32
    %c0_i32_1 = arith.constant 0 : i32
    %c0_i32_2 = arith.constant 0 : i32
    return %c0_i32, %c0_i32_0, %c0_i32_1 : i32, i32, i32
  }
  func.func @transform_7(%arg0: i32, %arg1: i32) -> (i32, i32, i32) {
    %c0_i32 = arith.constant 0 : i32
    %c0_i32_0 = arith.constant 0 : i32
    %c0_i32_1 = arith.constant 0 : i32
    %c0_i32_2 = arith.constant 0 : i32
    return %c0_i32, %c0_i32_0, %c0_i32_1 : i32, i32, i32
  }
  func.func @transform_8(%arg0: i32, %arg1: i32) -> (i32, i32) {
    %c0_i32 = arith.constant 0 : i32
    %c0_i32_0 = arith.constant 0 : i32
    %c0_i32_1 = arith.constant 0 : i32
    return %c0_i32, %c0_i32_0 : i32, i32
  }
  func.func @transform_9(%arg0: i32, %arg1: i32) -> (i32, i32) {
    %c0_i32 = arith.constant 0 : i32
    %c0_i32_0 = arith.constant 0 : i32
    return %arg0, %c0_i32 : i32, i32
  }
}

</mosaic_0001>

<bundles_post_ra>
// kernel: tpu_custom_call.1
= control target key start
LH: loop header
LB: loop body
LE: loop exit
PB: predicated region body
PF: predicated region fallthrough
CT: control target
= control target key end

     0   :  { %14 = vsyncpa [#allocation4], 0  ;;  %s1555_s0 = inlined_call_operand.vmem [shape: s32[1,256], index: 0, kind: input, shape index: {}]   ;;  %s1556_s1 = inlined_call_operand.vmem [shape: f32[256,6], index: 1, kind: input, shape index: {}]   ;;  %s1557_s2 = inlined_call_operand.vmem [shape: f32[256,32], index: 2, kind: input, shape index: {}]   ;;  %s1558_s3 = inlined_call_operand.vmem [shape: f32[6,32], index: 3, kind: input, shape index: {}]   ;;  %s1559_s4 = inlined_call_operand.vmem [shape: f32[32,128], index: 4, kind: input, shape index: {}]   ;;  %s1560_s5 = inlined_call_operand.vmem [shape: f32[1,128], index: 5, kind: input, shape index: {}]   ;;  %s1561_s6 = inlined_call_operand.vmem [shape: f32[2,128,128], index: 6, kind: input, shape index: {}]   ;;  %s1562_s7 = inlined_call_operand.vmem [shape: f32[2,1,128], index: 7, kind: input, shape index: {}]   ;;  %s1563_s8 = inlined_call_operand.vmem [shape: f32[128,128], index: 8, kind: input, shape index: {}]   ;;  %s1564_s9 = inlined_call_operand.hbm [shape: f32[16,128], index: 9, kind: output, shape index: {}]  }
   0x1   :  { %16 = vsyncpa [#allocation4 + $0x1], 0  ;;  %s1181_s30 = smov 0   ;;  %s1183_s10 = smov 0  }
   0x2   :  { %s1185_s11 = smov 0   ;;  %s1187_s12 = smov 0  }
   0x3   :  { %s1189_s13 = smov 0   ;;  %s1191_s14 = smov 0  }
   0x4   :  { %s1193_s15 = smov 0   ;;  %s1195_s16 = smov 0  }
   0x5 LB: > { %1570 = sst [smem:[#allocation6_spill]] %s1107_s11  ;;  %s890_s17 = sadd.s32 4294967295, %s1127_s16   ;;  %s1127_s16 = sphi %s1195_s16, %s22_s16   ;;  %s1123_s15 = sphi %s1193_s15, %s1584_s15   ;;  %s1119_s14 = sphi %s1191_s14, %s1583_s14   ;;  %s1115_s13 = sphi %s1189_s13, %s1582_s13   ;;  %s1111_s12 = sphi %s1187_s12, %s1581_s12   ;;  %s1107_s11 = sphi %s1185_s11, %s1580_s11   ;;  %s1103_s10 = sphi %s1183_s10, %s1586_s10   ;;  %s1099_s30 = sphi %s1181_s30, %s1585_s30  }
   0x6   : > { %1571 = sst [smem:[#allocation7_spill]] %s1119_s14  ;;  %s891_s18 = sadd.s32 4294967294, %s1127_s16  }
   0x7   : > { %1572 = sst [smem:[#allocation8_spill]] %s1123_s15  ;;  %s31_s19 = sadd.s32 1, %s1119_s14 }
   0x8   : > { %p32_p0 = scmp.ge.s32.totalorder %s31_s19, 2  ;;  %s34_s20 = sadd.s32 1, %s1123_s15 }
   0x9   : > { %p255_p1 = scmp.ne.s32.totalorder %s1107_s11, %s1103_s10  ;;  %p256_p2 = scmp.eq.s32.totalorder %s890_s17, 3 }
   0xa   : > { %s1588_s19 = smov (%p32_p0, %s31_s19), 0  ;;  %s1590_s20 = smov (!%p32_p0, %s34_s20), %s1123_s15 }
   0xb   : > { %1573 = sst [smem:[#allocation9_spill]] %s1588_s19  ;;  %p1230_p3 = por %p256_p2, %p255_p1 }
   0xc   : > { %p261_p4 = scmp.ne.s32.totalorder %s1103_s10, %s1099_s30  ;;  %p36_p5 = scmp.ge.s32.totalorder %s1590_s20, 2 }
   0xd   : > { %p262_p6 = scmp.eq.s32.totalorder %s891_s18, 3  ;;  %p894_p7 = scmp.ge.s32.totalorder %s1127_s16, 1 }
   0xe   : > { %p322_p8 = scmp.lt.s32.totalorder %s1127_s16, 5  ;;  %s1592_s20 = smov (%p36_p5, %s1590_s20), 0 }
   0xf   : > { %1575 = sst [smem:[#allocation10_spill]] %s1592_s20  ;;  %p1240_p9 = por %p262_p6, %p261_p4 }
  0x10   : > { %p323_p10 = pnand %p894_p7, %p322_p8  ;;  %s242_s23 = ssub.s32 %s1123_s15, %s1592_s20 }
  0x11   : > { %s245_s24 = sadd.s32 1, %s1107_s11  ;;  %p243_p11 = scmp.eq.s32.totalorder %s242_s23, 0 }
  0x12   : > { %326 = sbr.rel (%p323_p10) target bundleno = 967 (0x3c7), region = 56  ;;  %s1568_s26 = sand.u32 (!%p323_p10), 1, %s1103_s10  }
  0x13   : > { %s1248_s25 = scalar_select %p243_p11, %s1107_s11, %s245_s24  }
  0x14   : > { %p366_p12 = scmp.lt.s32.totalorder (!%p323_p10), %s1111_s12, 1  ;;  %s1254_s27 = sshll.u32 (!%p323_p10), %s1568_s26, 3 }
  0x15   : > { %1577 = sst [smem:[#allocation11_spill]] %s1248_s25  ;;  %s896_s28 = sshll.u32 (!%p323_p10), %s1111_s12, 4 }
  0x16   : > { %p370_p13 = scmp.lt.s32.totalorder (!%p323_p10), %s896_s28, 31  ;;  %s365_s11 = scalar_lea.vmem (!%p323_p10), [#allocation3], %s1254_s27 }
  0x17   : > { %s1258_s29 = scalar_select %p366_p12, %s1111_s12, 1 }
  0x18   : > { %s1594_s28 = smov (!%p370_p13, %s896_s28), 31  ;;  %p900_p0 = scmp.ne.s32.totalorder %s1111_s12, 0 }
  0x19   : > { %s368_s23 = scalar_lea.vmem %s1555_s0, %s1258_s29  ;;  %s897_s24 = sshll.u32 %s1594_s28, 3 }
  0x1a   : > { %s1267_s15 = scalar_lea.vmem %s1556_s1, %s897_s24  ;;  %s1272_s25 = scalar_lea.vmem %s1557_s2, %s897_s24 }
  0x1b   : > { %384 = sbr.rel (%p900_p0) target bundleno = 34 (0x22), region = 60 }
  0x20   : > { %vm385_vm0 = vcmask 261120   ;;  %v1129_v0 = vmov 0.0  }
  0x21   : > { %386 = vst.msk [vmem:[#allocation2] sm:$0xff] %vm385_vm0, %v1129_v0 }
  0x22 PF: > { %v403_v1 = vld [vmem:[%s1558_s3] sm:$0x3f]  ;;  %vm453_vm1 = vcmask 1045504   ;;  %v393_v2 = vld [vmem:[%s1267_s15 + $0x30] sm:$0xff]  ;;  %vm404_vm2 = vcmask 48128   ;;  %v394_v5 = vld [vmem:[%s1267_s15 + $0x38] sm:$0xff]  ;;  %v555_v56 = vlaneseq }
  0x23   : > { %v399_v3 = vld [vmem:[%s1267_s15 + $0x60] sm:$0xff]  ;;  %946 = vmatpush.msk.msra.mxu2 %vm453_vm1, %v403_v1  ;;  %947 = vmatpush.msk.msra.mxu3 %vm453_vm1, %v403_v1  ;;  %v400_v6 = vld [vmem:[%s1267_s15 + $0x68] sm:$0xff]  ;;  %v401_v9 = vld [vmem:[%s1267_s15 + $0x70] sm:$0xff]  ;;  %s918_s14 = sshll.u32 %s1115_s13, 3  ;;  %vm586_vm4 = vcmask 261120   ;;  %p921_p1 = scmp.ne.s32.totalorder %s1111_s12, 1 }
  0x24   : > { %908 = vmatmul.msk.f32.vlgmr.msra.gmra.mxu2 %vm404_vm2, %v393_v2  ;;  %914 = vmatmul.msk.f32.vlgmr.msra.gmra.mxu3 %vm404_vm2, %v399_v3  ;;  %v387_v4 = vld [vmem:[%s1267_s15] sm:$0xff]  ;;  %v388_v7 = vld [vmem:[%s1267_s15 + $0x8] sm:$0xff]  ;;  %v389_v10 = vld [vmem:[%s1267_s15 + $0x10] sm:$0xff]  ;;  %v556_v60 = vshrl.u32 %v555_v56, 7  ;;  %v558_v62 = vstv %s918_s14 }
  0x25   : > { %901 = vmatpush.msk.msra.mxu0 %vm453_vm1, %v403_v1  ;;  %v395_v8 = vld [vmem:[%s1267_s15 + $0x40] sm:$0xff]  ;;  %v396_v11 = vld [vmem:[%s1267_s15 + $0x48] sm:$0xff]  ;;  %v402_v12 = vld [vmem:[%s1267_s15 + $0x78] sm:$0xff] }
  0x26   : > { %902 = vmatmul.msk.f32.vlgmr.msra.gmra.mxu0 %vm404_vm2, %v387_v4  ;;  %v390_v13 = vld [vmem:[%s1267_s15 + $0x18] sm:$0xff]  ;;  %v397_v14 = vld [vmem:[%s1267_s15 + $0x50] sm:$0xff]  ;;  %v391_v15 = vld [vmem:[%s1267_s15 + $0x20] sm:$0xff]  ;;  %v559_v2 = vadd.s32 %v558_v62, %v556_v60 }
  0x27   : > { %v398_v16 = vld [vmem:[%s1267_s15 + $0x58] sm:$0xff]  ;;  %v392_v17 = vld [vmem:[%s1267_s15 + $0x28] sm:$0xff]  ;;  %v536_v28 = vld [vmem:[%s1272_s25 + $0x70] sm:$0xff] }
  0x28   : > { %v537_v27 = vld [vmem:[%s1272_s25 + $0x78] sm:$0xff]  ;;  %v535_v32 = vld [vmem:[%s1272_s25 + $0x68] sm:$0xff]  ;;  %v534_v34 = vld [vmem:[%s1272_s25 + $0x60] sm:$0xff] }
  0x29   : > { %v533_v39 = vld [vmem:[%s1272_s25 + $0x58] sm:$0xff]  ;;  %v532_v41 = vld [vmem:[%s1272_s25 + $0x50] sm:$0xff]  ;;  %v531_v44 = vld [vmem:[%s1272_s25 + $0x48] sm:$0xff] }
  0x2a   : > { %v530_v46 = vld [vmem:[%s1272_s25 + $0x40] sm:$0xff]  ;;  %v529_v48 = vld [vmem:[%s1272_s25 + $0x38] sm:$0xff]  ;;  %v528_v50 = vld [vmem:[%s1272_s25 + $0x30] sm:$0xff] }
  0x2b   : > { %v527_v52 = vld [vmem:[%s1272_s25 + $0x28] sm:$0xff]  ;;  %v526_v57 = vld [vmem:[%s1272_s25 + $0x20] sm:$0xff]  ;;  %v525_v58 = vld [vmem:[%s1272_s25 + $0x18] sm:$0xff] }
  0x2c   : > { %909 = vmatmul.msk.f32.gmra.mxu2 %vm404_vm2, %v394_v5  ;;  %915 = vmatmul.msk.f32.gmra.mxu3 %vm404_vm2, %v400_v6  ;;  %v524_v61 = vld [vmem:[%s1272_s25 + $0x10] sm:$0xff]  ;;  %v523_v0 = vld [vmem:[%s1272_s25 + $0x8] sm:$0xff]  ;;  %v1021_v3 = vld [vmem:[%s368_s23] ss:$0 sm:$0xff] }
  0x2d   : > { %v522_v4 = vld [vmem:[%s1272_s25] sm:$0xff]  ;;  %vm561_vm3 = vcmp.eq.s32.totalorder %v559_v2, %v1021_v3 }
  0x2e   : > { %903 = vmatmul.msk.f32.gmra.mxu0 %vm404_vm2, %v388_v7  ;;  %v1130_v7 = vmov 1.0  }
  0x34   : > { %910 = vmatmul.msk.f32.gmra.mxu2 %vm404_vm2, %v395_v8  ;;  %916 = vmatmul.msk.f32.gmra.mxu3 %vm404_vm2, %v401_v9  ;;  %v564_v8 = vld [vmem:[#allocation2] sm:$0xff] }
  0x36   : > { %904 = vmatmul.msk.f32.gmra.mxu0 %vm404_vm2, %v389_v10 }
  0x3c   : > { %911 = vmatmul.msk.f32.gmra.mxu2 %vm404_vm2, %v396_v11  ;;  %917 = vmatmul.msk.f32.gmra.mxu3 %vm404_vm2, %v402_v12 }
  0x3e   : > { %905 = vmatmul.msk.f32.gmra.mxu0 %vm404_vm2, %v390_v13 }
  0x44   : > { %912 = vmatmul.msk.f32.gmra.mxu2 %vm404_vm2, %v397_v14 }
  0x46   : > { %906 = vmatmul.msk.f32.gmra.mxu0 %vm404_vm2, %v391_v15 }
  0x4c   : > { %913 = vmatmul.msk.f32.gmra.mxu2 %vm404_vm2, %v398_v16 }
  0x4e   : > { %907 = vmatmul.msk.f32.gmra.mxu0 %vm404_vm2, %v392_v17 }
  0xa3   : > { %v1311_v18 = vpop.f32.mrf.mxu0 }
  0xa4   : > { %v538_v6 = vmul.f32 %v522_v4, %v1311_v18 }
  0xa7   : > { %v492_v19 = vpop.f32.mrf.mxu2  ;;  %v510_v20 = vpop.f32.mrf.mxu3 }
  0xa8   : > { %v550_v37 = vmul.f32 %v534_v34, %v510_v20  ;;  %v544_v54 = vmul.f32 %v528_v50, %v492_v19 }
  0xab   : > { %v477_v21 = vpop.f32.mrf.mxu0 }
  0xac   : > { %v539_v5 = vmul.f32 %v523_v0, %v477_v21 }
  0xaf   : > { %v495_v22 = vpop.f32.mrf.mxu2  ;;  %v513_v23 = vpop.f32.mrf.mxu3 }
  0xb0   : > { %v551_v36 = vmul.f32 %v535_v32, %v513_v23  ;;  %v545_v53 = vmul.f32 %v529_v48, %v495_v22 }
  0xb3   : > { %v480_v26 = vpop.f32.mrf.mxu0 }
  0xb4   : > { %v540_v1 = vmul.f32 %v524_v61, %v480_v26 }
  0xb7   : > { %v498_v24 = vpop.f32.mrf.mxu2  ;;  %v516_v25 = vpop.f32.mrf.mxu3 }
  0xb8   : > { %v552_v33 = vmul.f32 %v536_v28, %v516_v25  ;;  %v546_v49 = vmul.f32 %v530_v46, %v498_v24 }
  0xbb   : > { %v483_v35 = vpop.f32.mrf.mxu0 }
  0xbc   : > { %v541_v63 = vmul.f32 %v525_v58, %v483_v35 }
  0xbf   : > { %v501_v29 = vpop.f32.mrf.mxu2  ;;  %v519_v30 = vpop.f32.mrf.mxu3 }
  0xc0   : > { %v553_v31 = vmul.f32 %v537_v27, %v519_v30  ;;  %v547_v47 = vmul.f32 %v531_v44, %v501_v29 }
  0xc2   : > { %565 = vmatpush.msra.mxu1 %v553_v31 }
  0xc3   : > { %v486_v40 = vpop.f32.mrf.mxu0 }
  0xc4   : > { %566 = vmatpush.msra.mxu1 %v552_v33  ;;  %v542_v59 = vmul.f32 %v526_v57, %v486_v40 }
  0xc6   : > { %567 = vmatpush.msra.mxu1 %v551_v36 }
  0xc7   : > { %v504_v38 = vpop.f32.mrf.mxu2 }
  0xc8   : > { %568 = vmatpush.msra.mxu1 %v550_v37  ;;  %v548_v45 = vmul.f32 %v532_v41, %v504_v38 }
  0xcb   : > { %v489_v51 = vpop.f32.mrf.mxu0 }
  0xcc   : > { %v543_v55 = vmul.f32 %v527_v52, %v489_v51 }
  0xcf   : > { %v507_v42 = vpop.f32.mrf.mxu2 }
  0xd0   : > { %v549_v43 = vmul.f32 %v533_v39, %v507_v42 }
  0xd2   : > { %569 = vmatpush.msra.mxu1 %v549_v43 }
  0xd4   : > { %570 = vmatpush.msra.mxu1 %v548_v45 }
  0xd6   : > { %571 = vmatpush.msra.mxu1 %v547_v47 }
  0xd8   : > { %572 = vmatpush.msra.mxu1 %v546_v49 }
  0xda   : > { %573 = vmatpush.msra.mxu1 %v545_v53 }
  0xdc   : > { %574 = vmatpush.msra.mxu1 %v544_v54 }
  0xde   : > { %575 = vmatpush.msra.mxu1 %v543_v55 }
  0xe0   : > { %576 = vmatpush.msra.mxu1 %v542_v59 }
  0xe2   : > { %577 = vmatpush.msra.mxu1 %v541_v63 }
  0xe4   : > { %578 = vmatpush.msra.mxu1 %v540_v1 }
  0xe6   : > { %579 = vmatpush.msra.mxu1 %v539_v5 }
  0xe8   : > { %580 = vmatpush.msra.mxu1 %v538_v6 }
  0xe9   : > { %920 = vmatmul.msk.f32.vlgmr.msra.gmra.mxu1 %vm561_vm3, %v1130_v7 }
 0x165   : > { %591 = sbr.rel (%p921_p1) target bundleno = 953 (0x3b9), region = 64 }
 0x166   : > { %v582_v9 = vpop.f32.mrf.mxu1 }
 0x167   : > { %v585_v10 = vadd.f32 %v582_v9, %v564_v8 }
 0x169   : > { %587 = vst.msk [vmem:[#allocation2] sm:$0xff] %vm586_vm4, %v585_v10 }
 0x16a   : > { %v596_v11 = vld [vmem:[%s1559_s4 + $0x18] sm:$0xff]  ;;  %v595_v12 = vld [vmem:[%s1559_s4 + $0x10] sm:$0xff]  ;;  %v594_v14 = vld [vmem:[%s1559_s4 + $0x8] sm:$0xff] }
 0x16b   : > { %616 = vmatpush.msra.mxu0 %v596_v11  ;;  %v639_v13 = vld [vmem:[%s1561_s6 + $0x78] sm:$0xff]  ;;  %v638_v15 = vld [vmem:[%s1561_s6 + $0x70] sm:$0xff]  ;;  %v637_v16 = vld [vmem:[%s1561_s6 + $0x68] sm:$0xff] }
 0x16c   : > { %644 = vmatpush.msra.mxu1 %v639_v13  ;;  %v593_v17 = vld [vmem:[%s1559_s4] sm:$0xff]  ;;  %v635_v20 = vld [vmem:[%s1561_s6 + $0x58] sm:$0xff]  ;;  %v634_v21 = vld [vmem:[%s1561_s6 + $0x50] sm:$0xff] }
 0x16d   : > { %617 = vmatpush.msra.mxu0 %v595_v12  ;;  %v636_v19 = vld [vmem:[%s1561_s6 + $0x60] sm:$0xff]  ;;  %v633_v22 = vld [vmem:[%s1561_s6 + $0x48] sm:$0xff]  ;;  %v631_v24 = vld [vmem:[%s1561_s6 + $0x38] sm:$0xff] }
 0x16e   : > { %645 = vmatpush.msra.mxu1 %v638_v15  ;;  %v632_v23 = vld [vmem:[%s1561_s6 + $0x40] sm:$0xff]  ;;  %v630_v25 = vld [vmem:[%s1561_s6 + $0x30] sm:$0xff]  ;;  %v629_v26 = vld [vmem:[%s1561_s6 + $0x28] sm:$0xff] }
 0x16f   : > { %618 = vmatpush.msra.mxu0 %v594_v14  ;;  %v628_v27 = vld [vmem:[%s1561_s6 + $0x20] sm:$0xff]  ;;  %v627_v28 = vld [vmem:[%s1561_s6 + $0x18] sm:$0xff]  ;;  %v626_v29 = vld [vmem:[%s1561_s6 + $0x10] sm:$0xff] }
 0x170   : > { %v592_v18 = vld [vmem:[#allocation2] sm:$0xff]  ;;  %646 = vmatpush.msra.mxu1 %v637_v16  ;;  %v625_v30 = vld [vmem:[%s1561_s6 + $0x8] sm:$0xff]  ;;  %v939_v35 = vld [vmem:[%s1561_s6 + $0xf8] sm:$0xff] }
 0x171   : > { %619 = vmatpush.msra.mxu0 %v593_v17  ;;  %v624_v31 = vld [vmem:[%s1561_s6] sm:$0xff]  ;;  %706 = vmatpush.msra.mxu2 %v939_v35  ;;  %v938_v36 = vld [vmem:[%s1561_s6 + $0xf0] sm:$0xff]  ;;  %v937_v37 = vld [vmem:[%s1561_s6 + $0xe8] sm:$0xff] }
 0x172   : > { %922 = vmatmul.msk.f32.vlgmr.msra.gmra.mxu0 %vm586_vm4, %v592_v18  ;;  %647 = vmatpush.msra.mxu1 %v636_v19  ;;  %v1022_v32 = vld [vmem:[%s1560_s5] ss:$0 sm:$0xff]  ;;  %v935_v39 = vld [vmem:[%s1561_s6 + $0xd8] sm:$0xff]  ;;  %v934_v40 = vld [vmem:[%s1561_s6 + $0xd0] sm:$0xff] }
 0x173   : > { %707 = vmatpush.msra.mxu2 %v938_v36  ;;  %v936_v38 = vld [vmem:[%s1561_s6 + $0xe0] sm:$0xff]  ;;  %v933_v41 = vld [vmem:[%s1561_s6 + $0xc8] sm:$0xff]  ;;  %v931_v43 = vld [vmem:[%s1561_s6 + $0xb8] sm:$0xff] }
 0x174   : > { %648 = vmatpush.msra.mxu1 %v635_v20  ;;  %v932_v42 = vld [vmem:[%s1561_s6 + $0xc0] sm:$0xff]  ;;  %v930_v44 = vld [vmem:[%s1561_s6 + $0xb0] sm:$0xff]  ;;  %v929_v45 = vld [vmem:[%s1561_s6 + $0xa8] sm:$0xff] }
 0x175   : > { %708 = vmatpush.msra.mxu2 %v937_v37  ;;  %v928_v46 = vld [vmem:[%s1561_s6 + $0xa0] sm:$0xff]  ;;  %v927_v47 = vld [vmem:[%s1561_s6 + $0x98] sm:$0xff]  ;;  %v926_v48 = vld [vmem:[%s1561_s6 + $0x90] sm:$0xff] }
 0x176   : > { %649 = vmatpush.msra.mxu1 %v634_v21  ;;  %v925_v49 = vld [vmem:[%s1561_s6 + $0x88] sm:$0xff]  ;;  %v1023_v50 = vld [vmem:[%s1562_s7] ss:$0 sm:$0xff]  ;;  %v761_v4 = vld [vmem:[%s1563_s8 + $0x78] sm:$0xff] }
 0x177   : > { %709 = vmatpush.msra.mxu2 %v936_v38  ;;  %v924_v51 = vld [vmem:[%s1561_s6 + $0x80] sm:$0xff]  ;;  %762 = vmatpush.msra.mxu3 %v761_v4  ;;  %v760_v5 = vld [vmem:[%s1563_s8 + $0x70] sm:$0xff]  ;;  %v759_v6 = vld [vmem:[%s1563_s8 + $0x68] sm:$0xff] }
 0x178   : > { %650 = vmatpush.msra.mxu1 %v633_v22  ;;  %v758_v7 = vld [vmem:[%s1563_s8 + $0x60] sm:$0xff]  ;;  %v757_v8 = vld [vmem:[%s1563_s8 + $0x58] sm:$0xff]  ;;  %v756_v9 = vld [vmem:[%s1563_s8 + $0x50] sm:$0xff] }
 0x179   : > { %710 = vmatpush.msra.mxu2 %v935_v39  ;;  %763 = vmatpush.msra.mxu3 %v760_v5  ;;  %v755_v10 = vld [vmem:[%s1563_s8 + $0x48] sm:$0xff]  ;;  %v754_v11 = vld [vmem:[%s1563_s8 + $0x40] sm:$0xff]  ;;  %v753_v12 = vld [vmem:[%s1563_s8 + $0x38] sm:$0xff] }
 0x17a   : > { %651 = vmatpush.msra.mxu1 %v632_v23  ;;  %v752_v13 = vld [vmem:[%s1563_s8 + $0x30] sm:$0xff]  ;;  %v751_v14 = vld [vmem:[%s1563_s8 + $0x28] sm:$0xff]  ;;  %v750_v15 = vld [vmem:[%s1563_s8 + $0x20] sm:$0xff] }
 0x17b   : > { %711 = vmatpush.msra.mxu2 %v934_v40  ;;  %764 = vmatpush.msra.mxu3 %v759_v6  ;;  %v749_v16 = vld [vmem:[%s1563_s8 + $0x18] sm:$0xff]  ;;  %v748_v17 = vld [vmem:[%s1563_s8 + $0x10] sm:$0xff]  ;;  %v747_v18 = vld [vmem:[%s1563_s8 + $0x8] sm:$0xff] }
 0x17c   : > { %652 = vmatpush.msra.mxu1 %v631_v24  ;;  %v1024_v19 = vld [vmem:[%s1562_s7 + $0x1] ss:$0 sm:$0xff] }
 0x17d   : > { %712 = vmatpush.msra.mxu2 %v933_v41  ;;  %765 = vmatpush.msra.mxu3 %v758_v7  ;;  %v746_v20 = vld [vmem:[%s1563_s8] sm:$0xff] }
 0x17e   : > { %653 = vmatpush.msra.mxu1 %v630_v25 }
 0x17f   : > { %713 = vmatpush.msra.mxu2 %v932_v42  ;;  %766 = vmatpush.msra.mxu3 %v757_v8 }
 0x180   : > { %654 = vmatpush.msra.mxu1 %v629_v26 }
 0x181   : > { %714 = vmatpush.msra.mxu2 %v931_v43  ;;  %767 = vmatpush.msra.mxu3 %v756_v9 }
 0x182   : > { %655 = vmatpush.msra.mxu1 %v628_v27 }
 0x183   : > { %715 = vmatpush.msra.mxu2 %v930_v44  ;;  %768 = vmatpush.msra.mxu3 %v755_v10 }
 0x184   : > { %656 = vmatpush.msra.mxu1 %v627_v28 }
 0x185   : > { %716 = vmatpush.msra.mxu2 %v929_v45  ;;  %769 = vmatpush.msra.mxu3 %v754_v11 }
 0x186   : > { %657 = vmatpush.msra.mxu1 %v626_v29 }
 0x187   : > { %717 = vmatpush.msra.mxu2 %v928_v46  ;;  %770 = vmatpush.msra.mxu3 %v753_v12 }
 0x188   : > { %658 = vmatpush.msra.mxu1 %v625_v30 }
 0x189   : > { %718 = vmatpush.msra.mxu2 %v927_v47  ;;  %771 = vmatpush.msra.mxu3 %v752_v13 }
 0x18a   : > { %659 = vmatpush.msra.mxu1 %v624_v31 }
 0x18b   : > { %719 = vmatpush.msra.mxu2 %v926_v48  ;;  %772 = vmatpush.msra.mxu3 %v751_v14 }
 0x18d   : > { %720 = vmatpush.msra.mxu2 %v925_v49  ;;  %773 = vmatpush.msra.mxu3 %v750_v15 }
 0x18f   : > { %721 = vmatpush.msra.mxu2 %v924_v51  ;;  %774 = vmatpush.msra.mxu3 %v749_v16 }
 0x191   : > { %775 = vmatpush.msra.mxu3 %v748_v17 }
 0x193   : > { %776 = vmatpush.msra.mxu3 %v747_v18 }
 0x195   : > { %777 = vmatpush.msra.mxu3 %v746_v20 }
 0x1ef   : > { %v621_v33 = vpop.f32.mrf.mxu0 }
 0x1f0   : > { %v622_v34 = vadd.f32 %v1022_v32, %v621_v33 }
 0x1f2   : > { %660 = vmatmul.f32.vlgmr.msra.gmra.mxu1 %v622_v34 }
 0x26f   : > { %v661_v52 = vpop.f32.mrf.mxu1 }
 0x270   : > { %v662_v53 = vadd.f32 %v1023_v50, %v661_v52 }
 0x272   : > { %v923_v54 = vmul.f32 -1.442695, %v662_v53 }
 0x274   : > { %1025 = vpow2.f32 %v923_v54 }
 0x27a   : > { %v1026_v55 = vpop.eup %1025 }
 0x27b   : > { %v667_v56 = vadd.f32 1.0, %v1026_v55 }
 0x27d   : > { %1027 = vrcp.f32 %v667_v56  ;;  %v679_v60 = vand.u32 2147483648, %v667_v56  ;;  %v677_v62 = vand.u32 2147483647, %v667_v56  ;;  %vm673_vm6 = vweird.f32 %v667_v56 }
 0x27f   : > { %v680_v0 = vor.u32 1.1754944e-38, %v679_v60  ;;  %vm678_vm8 = vcmp.eq.f32.partialorder %v677_v62, 8.507059e+37 }
 0x283   : > { %v1028_v57 = vpop.eup %1027 }
 0x284   : > { %v669_v58 = vmul.f32 %v1028_v57, %v667_v56  ;;  %vm674_vm5 = vweird.f32 %v1028_v57 }
 0x285   : > { %vm675_vm7 = vmor %vm673_vm6, %vm674_vm5 }
 0x286   : > { %v670_v59 = vsub.f32 1.0, %v669_v58 }
 0x288   : > { %v671_v61 = vmul.f32 %v1028_v57, %v670_v59 }
 0x28a   : > { %v672_v63 = vadd.f32 %v1028_v57, %v671_v61 }
 0x28c   : > { %v676_v1 = vsel %vm675_vm7, %v1028_v57, %v672_v63 }
 0x28d   : > { %v681_v2 = vsel %vm678_vm8, %v680_v0, %v676_v1 }
 0x28e   : > { %v683_v3 = vmul.f32 %v681_v2, %v662_v53 }
 0x290   : > { %722 = vmatmul.f32.vlgmr.msra.gmra.mxu2 %v683_v3 }
 0x313   : > { %v723_v21 = vpop.f32.mrf.mxu2 }
 0x314   : > { %v724_v22 = vadd.f32 %v1024_v19, %v723_v21 }
 0x316   : > { %v941_v23 = vmul.f32 -1.442695, %v724_v22 }
 0x318   : > { %1029 = vpow2.f32 %v941_v23 }
 0x31e   : > { %v1030_v24 = vpop.eup %1029 }
 0x31f   : > { %v729_v25 = vadd.f32 1.0, %v1030_v24 }
 0x321   : > { %1031 = vrcp.f32 %v729_v25  ;;  %v741_v29 = vand.u32 2147483648, %v729_v25  ;;  %v739_v31 = vand.u32 2147483647, %v729_v25  ;;  %vm735_vm10 = vweird.f32 %v729_v25 }
 0x323   : > { %v742_v33 = vor.u32 1.1754944e-38, %v741_v29  ;;  %vm740_vm12 = vcmp.eq.f32.partialorder %v739_v31, 8.507059e+37 }
 0x327   : > { %v1032_v26 = vpop.eup %1031 }
 0x328   : > { %v731_v27 = vmul.f32 %v1032_v26, %v729_v25  ;;  %vm736_vm9 = vweird.f32 %v1032_v26 }
 0x329   : > { %vm737_vm11 = vmor %vm735_vm10, %vm736_vm9 }
 0x32a   : > { %v732_v28 = vsub.f32 1.0, %v731_v27 }
 0x32c   : > { %v733_v30 = vmul.f32 %v1032_v26, %v732_v28 }
 0x32e   : > { %v734_v32 = vadd.f32 %v1032_v26, %v733_v30 }
 0x330   : > { %v738_v34 = vsel %vm737_vm11, %v1032_v26, %v734_v32 }
 0x331   : > { %v743_v35 = vsel %vm740_vm12, %v742_v33, %v738_v34 }
 0x332   : > { %v745_v36 = vmul.f32 %v743_v35, %v724_v22 }
 0x334   : > { %778 = vmatmul.f32.vlgmr.msra.gmra.mxu3 %v745_v36 }
 0x3b7   : > { %v779_v37 = vpop.f32.mrf.mxu3 }
 0x3b8   : > { %782 = vst [vmem:[%s365_s11] sm:$0xff] %v779_v37 }
 0x3b9 PF: > { %s794_s18 = scalar_lea.hbm %s1564_s9, %s918_s14  ;;  %s796_s23 = sshll.u32 %s365_s11, 4  ;;  %s797_s23 = int_to_ptr.vmem [resolvable:$true] %s796_s23 }
 0x3ba   : > { %s798_s24 = sshll.u32 %s794_s18, 4  ;;  %s1578_s17 = sand.u32 1, %s1103_s10   ;;  %s799_s24 = int_to_ptr.hbm [resolvable:$true] %s798_s24 }
 0x3bb   : > { %s784_s12 = scalar_lea.sflag [#allocation4], %s1578_s17  ;;  %s1047_s28 = sshra.s32 %s799_s24, 4  ;;  %s1048_s28 = int_to_ptr.hbm [resolvable:$true] %s1047_s28 }
 0x3bc   : > { %s1049_s15 = scalar_lea.hbm %s1048_s28, 8  ;;  %s1053_s20 = scalar_lea.hbm %s1564_s9, 16 }
 0x3bd   : > { %p1050_p2 = scmp.ne.s32.totalorder %s1048_s28, %s1049_s15  ;;  %p1054_p6 = scmp.lt.s32.totalorder %s1048_s28, %s1564_s9 }
 0x3be   : > { %p1055_p7 = scmp.lt.s32.totalorder %s1053_s20, %s1049_s15 }
 0x3bf   : > { %p1051_p4 = pnand %p1050_p2, %p1230_p3 }
 0x3c0   : > { %p1056_p8 = por %p1055_p7, %p1054_p6 }
 0x3c1   : > { %p1052_p5 = pneg %p1051_p4 }
 0x3c3   : > { %p1057_p10 = pnand %p1056_p8, %p1052_p5 }
 0x3c5   : > { %1060 = shalt.err (!%p1057_p10)
}
 0x3c6   : > { %948 = dma.vmem_to_hbm [thread:$0]  (%p1230_p3), %s797_s23, 128, %s799_s24, %s784_s12  }
 0x3c7 PF: > { %p954_p11 = scmp.ge.s32.totalorder %s1127_s16, 2  ;;  %s810_s11 = sand.u32 1, %s1099_s30  }
 0x3c8   : > { %s811_s27 = scalar_lea.sflag [#allocation4], %s810_s11 }
 0x3c9   : > { %p951_p12 = pnand %p954_p11, %p1240_p9 }
 0x3cb   : > { %p952_p13 = pneg %p951_p12 }
 0x3cd   : > { %1094 = dma.done.wait (%p952_p13), %s811_s27, 128  }
 0x3ce   : > { %1096 = vsyncadd (%p952_p13), %s811_s27, 4294967168  ;;  %s22_s16 = sadd.s32 1, %s1127_s16   ;;  %s1579_s26 = sld [smem:[#allocation6_spill]] }
 0x3cf   : > { %p19_p0 = scmp.ge.s32.totalorder %s22_s16, 6   ;;  %s1580_s11 = sld [smem:[#allocation11_spill]] }
 0x3d0   : > { %s1581_s12 = sld [smem:[#allocation7_spill]]  ;;  %s1585_s30 = smov %s1103_s10 }
 0x3d1   : > { %s1582_s13 = sld [smem:[#allocation8_spill]]  ;;  %21 = sbr.rel (!%p19_p0) target bundleno = 5 (0x5), region = 107 }
 0x3d2   : > { %s1583_s14 = sld [smem:[#allocation9_spill]] }
 0x3d3   : > { %s1584_s15 = sld [smem:[#allocation10_spill]] }
 0x3d4   : > { %s1586_s10 = smov %s1579_s26 }
 0x3d6   :  { %817 = vsyncpa [#allocation4], 1 }
 0x3d7   :  { %819 = vsyncpa [#allocation4 + $0x1], 1 }

</bundles_post_ra>
